<compile_context>
chip_gen: v6e
topology: v6e:2x2x1
jax: 0.10.0
libtpu: 0.0.40
codegen_flags: <defaults>
</compile_context>

<pallas_src>
import functools

import jax
import jax.numpy as jnp
from jax.experimental import pallas as pl
from jax.experimental.pallas import tpu as pltpu


def _bpr_loss_kernel(pos_ref, neg_ref, out_ref, acc_ref, *,
                     n_valid, tile_rows, width):
    i = pl.program_id(0)

    @pl.when(i == 0)
    def _init():
        acc_ref[...] = jnp.zeros_like(acc_ref)

    pos = pos_ref[...].astype(jnp.float32)
    neg = neg_ref[...].astype(jnp.float32)
    d = pos - neg
    # -log(sigmoid(d)) == softplus(-d); numerically-stable form:
    #   softplus(-d) = max(-d, 0) + log1p(exp(-|d|))
    per_elem = jnp.maximum(-d, 0.0) + jnp.log1p(jnp.exp(-jnp.abs(d)))

    # Mask padded tail elements (global flat index >= true element count).
    row = jax.lax.broadcasted_iota(jnp.int32, (tile_rows, width), 0)
    col = jax.lax.broadcasted_iota(jnp.int32, (tile_rows, width), 1)
    flat_idx = (i * tile_rows + row) * width + col
    per_elem = jnp.where(flat_idx < n_valid, per_elem, 0.0)

    # Per-lane partial sums: fold the sublane-groups axis with VPU adds only;
    # no cross-lane (XLU) reduce in the steady-state loop.
    partial = per_elem.reshape(tile_rows // 8, 8, width).sum(axis=0)
    acc_ref[...] += partial

    @pl.when(i == pl.num_programs(0) - 1)
    def _finalize():
        # Single cross-lane reduce + precomputed 1/N scale, once.
        out_ref[0, 0] = jnp.sum(acc_ref[...]) * jnp.float32(1.0 / n_valid)


def bpr_loss(pos_score: jax.Array,
             neg_score: jax.Array,
             *,
             tile_rows: int = 512,
             width: int = 1024,
             min_kernel_elems: int = 1 << 16,
             force_kernel: bool = False) -> jax.Array:
    """BPR loss: mean(-log(sigmoid(pos - neg))). Returns a float32 scalar."""
    assert pos_score.shape == neg_score.shape, "pos/neg scores must be paired"
    assert width % 128 == 0 and tile_rows % 8 == 0, "tile must be (8,128)-aligned"

    n = int(pos_score.size)
    if n == 0 or (n < min_kernel_elems and not force_kernel):
        # Kernel launch overhead dominates tiny problems; use plain JAX.
        return bpr_loss_ref(pos_score, neg_score)

    tile_elems = tile_rows * width
    n_tiles = -(-n // tile_elems)
    padded = n_tiles * tile_elems

    # Lane-dense flatten; keep original dtype (e.g. bf16) through the DMA.
    pos_flat = pos_score.reshape(-1)
    neg_flat = neg_score.reshape(-1)
    pad = padded - n
    if pad:
        pos_flat = jnp.pad(pos_flat, (0, pad))
        neg_flat = jnp.pad(neg_flat, (0, pad))
    pos2 = pos_flat.reshape(n_tiles * tile_rows, width)
    neg2 = neg_flat.reshape(n_tiles * tile_rows, width)

    kernel = functools.partial(_bpr_loss_kernel, n_valid=n,
                               tile_rows=tile_rows, width=width)
    out = pl.pallas_call(
        kernel,
        out_shape=jax.ShapeDtypeStruct((1, 1), jnp.float32),
        grid=(n_tiles,),
        in_specs=[
            pl.BlockSpec((tile_rows, width), lambda i: (i, 0)),
            pl.BlockSpec((tile_rows, width), lambda i: (i, 0)),
        ],
        out_specs=pl.BlockSpec(memory_space=pltpu.SMEM),
        scratch_shapes=[pltpu.VMEM((8, width), jnp.float32)],
        compiler_params=pltpu.CompilerParams(
            dimension_semantics=("arbitrary",)),
    )(pos2, neg2)
    return out[0, 0]


def bpr_loss_ref(pos_score, neg_score):
    """Pure-JAX reference for correctness checking (f32 accumulation)."""
    pos = pos_score.astype(jnp.float32)
    neg = neg_score.astype(jnp.float32)
    return jnp.mean(-jax.nn.log_sigmoid(pos - neg)).astype(jnp.float32)


if __name__ == "__main__":
    key = jax.random.PRNGKey(0)
    k_pos, k_neg = jax.random.split(key)
    # Ragged sample count -> exercises padding + in-kernel tail masking.
    batch, samples = 8, 300
    pos = jax.random.normal(k_pos, (batch, samples), dtype=jnp.float32)
    neg = jax.random.normal(k_neg, (batch, samples), dtype=jnp.float32)

    # Small tiles so this tiny demo still spans several grid steps
    # (exercises init / per-step accumulate / finalize paths).
    loss = bpr_loss(pos, neg, tile_rows=8, width=128, force_kernel=True)
    jax.block_until_ready(loss)
    ref = bpr_loss_ref(pos, neg)
    assert jnp.allclose(loss, ref, atol=1e-5, rtol=1e-5), (loss, ref)

    # bf16 inputs: stay bf16 through the DMA, cast to f32 inside the kernel.
    pos_bf = pos.astype(jnp.bfloat16)
    neg_bf = neg.astype(jnp.bfloat16)
    loss_bf = bpr_loss(pos_bf, neg_bf, tile_rows=8, width=128,
                       force_kernel=True)
    jax.block_until_ready(loss_bf)
    ref_bf = bpr_loss_ref(pos_bf, neg_bf)
    assert jnp.allclose(loss_bf, ref_bf, atol=1e-4, rtol=1e-4), (loss_bf, ref_bf)

    print("KERNEL_OK")
</pallas_src>

<mosaic_0001>
module attributes {stable_mosaic.version = 11 : i64} {
  func.func @_bpr_loss_kernel(%arg0: i32, %arg1: memref<8x128xf32, #tpu.memory_space<vmem>>, %arg2: memref<8x128xf32, #tpu.memory_space<vmem>>, %arg3: memref<1x1xf32, #tpu.memory_space<smem>>, %arg4: memref<8x128xf32, #tpu.memory_space<vmem>>) attributes {dimension_semantics = [#tpu.dimension_semantics<arbitrary>], iteration_bounds = array<i64: 3>, scalar_prefetch = 0 : i64, scratch_operands = 1 : i64, tpu.core_type = #tpu.core_type<tc>, window_params = [{transform_indices = @transform_0, window_bounds = array<i64: 8, 128>}, {transform_indices = @transform_1, window_bounds = array<i64: 8, 128>}, {transform_indices = @transform_2, window_bounds = array<i64: 1, 1>}]} {
    %c0_i32 = arith.constant 0 : i32
    %0 = arith.cmpi eq, %arg0, %c0_i32 : i32
    %1 = arith.extui %0 : i1 to i32
    %c0_i32_0 = arith.constant 0 : i32
    %2 = arith.cmpi ne, %1, %c0_i32_0 : i32
    scf.if %2 {
      %cst_13 = arith.constant 0.000000e+00 : f32
      %36 = vector.broadcast %cst_13 : f32 to vector<8x128xf32>
      %c0_14 = arith.constant 0 : index
      %c0_15 = arith.constant 0 : index
      %37 = vector.load %arg4[%c0_14, %c0_15] : memref<8x128xf32, #tpu.memory_space<vmem>>, vector<8x128xf32>
      tpu.vector_store %arg4[%c0_14, %c0_15], %36 {strides = array<i32>} : memref<8x128xf32, #tpu.memory_space<vmem>>, vector<8x128xf32>,
    } else {
    }
    %c0 = arith.constant 0 : index
    %c0_1 = arith.constant 0 : index
    %3 = vector.load %arg1[%c0, %c0_1] : memref<8x128xf32, #tpu.memory_space<vmem>>, vector<8x128xf32>
    %c0_2 = arith.constant 0 : index
    %c0_3 = arith.constant 0 : index
    %4 = vector.load %arg2[%c0_2, %c0_3] : memref<8x128xf32, #tpu.memory_space<vmem>>, vector<8x128xf32>
    %5 = arith.subf %3, %4 : vector<8x128xf32>
    %cst = arith.constant 0.000000e+00 : f32
    %6 = vector.broadcast %cst : f32 to vector<8x128xf32>
    %7 = arith.subf %6, %5 : vector<8x128xf32>
    %cst_4 = arith.constant 0.000000e+00 : f32
    %8 = vector.broadcast %cst_4 : f32 to vector<8x128xf32>
    %9 = arith.maximumf %7, %8 : vector<8x128xf32>
    %10 = math.absf %5 : vector<8x128xf32>
    %cst_5 = arith.constant 0.000000e+00 : f32
    %11 = vector.broadcast %cst_5 : f32 to vector<8x128xf32>
    %12 = arith.subf %11, %10 : vector<8x128xf32>
    %13 = math.exp %12 : vector<8x128xf32>
    %14 = math.log1p %13 : vector<8x128xf32>
    %15 = arith.addf %9, %14 : vector<8x128xf32>
    %16 = tpu.iota {dimensions = array<i32: 0>} : vector<8x128xi32>
    %17 = tpu.iota {dimensions = array<i32: 1>} : vector<8x128xi32>
    %c8_i32 = arith.constant 8 : i32
    %18 = arith.muli %arg0, %c8_i32 : i32
    %19 = vector.broadcast %18 : i32 to vector<8x128xi32>
    %20 = arith.addi %19, %16 : vector<8x128xi32>
    %c128_i32 = arith.constant 128 : i32
    %21 = vector.broadcast %c128_i32 : i32 to vector<8x128xi32>
    %22 = arith.muli %20, %21 : vector<8x128xi32>
    %23 = arith.addi %22, %17 : vector<8x128xi32>
    %c2400_i32 = arith.constant 2400 : i32
    %24 = vector.broadcast %c2400_i32 : i32 to vector<8x128xi32>
    %25 = arith.cmpi slt, %23, %24 : vector<8x128xi32>
    %cst_6 = arith.constant 0.000000e+00 : f32
    %26 = vector.broadcast %cst_6 : f32 to vector<8x128xf32>
    %27 = arith.select %25, %15, %26 : vector<8x128xi1>, vector<8x128xf32>
    %28 = vector.shape_cast %27 : vector<8x128xf32> to vector<1x8x128xf32>
    %cst_7 = arith.constant dense<0.000000e+00> : vector<8x128xf32>
    %29 = vector.multi_reduction <add>, %28, %cst_7 [0] : vector<1x8x128xf32> to vector<8x128xf32>
    %c0_8 = arith.constant 0 : index
    %c0_9 = arith.constant 0 : index
    %30 = vector.load %arg4[%c0_8, %c0_9] : memref<8x128xf32, #tpu.memory_space<vmem>>, vector<8x128xf32>
    %31 = arith.addf %30, %29 : vector<8x128xf32>
    %c0_10 = arith.constant 0 : index
    %c0_11 = arith.constant 0 : index
    %32 = vector.load %arg4[%c0_10, %c0_11] : memref<8x128xf32, #tpu.memory_space<vmem>>, vector<8x128xf32>
    tpu.vector_store %arg4[%c0_10, %c0_11], %31 {strides = array<i32>} : memref<8x128xf32, #tpu.memory_space<vmem>>, vector<8x128xf32>,
    %c2_i32 = arith.constant 2 : i32
    %33 = arith.cmpi eq, %arg0, %c2_i32 : i32
    %34 = arith.extui %33 : i1 to i32
    %c0_i32_12 = arith.constant 0 : i32
    %35 = arith.cmpi ne, %34, %c0_i32_12 : i32
    scf.if %35 {
      %c0_13 = arith.constant 0 : index
      %c0_14 = arith.constant 0 : index
      %36 = vector.load %arg4[%c0_13, %c0_14] : memref<8x128xf32, #tpu.memory_space<vmem>>, vector<8x128xf32>
      %37 = vector.shape_cast %36 : vector<8x128xf32> to vector<1x8x128xf32>
      %cst_15 = arith.constant dense<0.000000e+00> : vector<1xf32>
      %38 = vector.multi_reduction <add>, %37, %cst_15 [1, 2] : vector<1x8x128xf32> to vector<1xf32>
      %39 = vector.shape_cast %38 : vector<1xf32> to vector<1x1x1xf32>
      %40 = vector.extract %39[0, 0, 0] : f32 from vector<1x1x1xf32>
      %cst_16 = arith.constant 4.16666677E-4 : f32
      %41 = arith.mulf %40, %cst_16 : f32
      %c0_17 = arith.constant 0 : index
      %c0_18 = arith.constant 0 : index
      %42 = memref.load %arg3[%c0_17, %c0_18] : memref<1x1xf32, #tpu.memory_space<smem>>
      memref.store %41, %arg3[%c0_17, %c0_18] : memref<1x1xf32, #tpu.memory_space<smem>>
    } else {
    }
    return
  }
  func.func @transform_0(%arg0: i32) -> (i32, i32) {
    %c0_i32 = arith.constant 0 : i32
    %c0_i32_0 = arith.constant 0 : i32
    return %arg0, %c0_i32 : i32, i32
  }
  func.func @transform_1(%arg0: i32) -> (i32, i32) {
    %c0_i32 = arith.constant 0 : i32
    %c0_i32_0 = arith.constant 0 : i32
    return %arg0, %c0_i32 : i32, i32
  }
  func.func @transform_2(%arg0: i32) -> (i32, i32) {
    %c0_i32 = arith.constant 0 : i32
    %c0_i32_0 = arith.constant 0 : i32
    %c0_i32_1 = arith.constant 0 : i32
    return %c0_i32, %c0_i32_0 : i32, i32
  }
}

</mosaic_0001>

<bundles_post_ra>
// kernel: tpu_custom_call.1
= control target key start
LH: loop header
LB: loop body
LE: loop exit
PB: predicated region body
PF: predicated region fallthrough
CT: control target
= control target key end

     0   :  { %7 = vsyncpa [#allocation4], 0  ;;  %s677_s0 = inlined_call_operand.hbm [shape: f32[24,128], index: 0, kind: input, shape index: {}]   ;;  %s678_s1 = inlined_call_operand.hbm [shape: f32[24,128], index: 1, kind: input, shape index: {}]   ;;  %s679_s2 = inlined_call_operand.hbm [shape: f32[1,1], index: 2, kind: output, shape index: {}]  }
   0x1   :  { %9 = vsyncpa [#allocation4 + $0x1], 0 }
   0x2   :  { %10 = vsyncpa [#allocation7], 0 }
   0x3   :  { %12 = vsyncpa [#allocation7 + $0x1], 0 }
   0x4   :  { %13 = vsyncpa [#allocation5], 0  ;;  %s523_s9 = smov 0   ;;  %s525_s10 = smov 0  }
   0x5   :  { %s527_s11 = smov 0   ;;  %s529_s12 = smov 0  }
   0x6 LB: > { %s542_s13 = sadd.s32 4294967295, %s502_s12   ;;  %s545_s14 = sadd.s32 1, %s502_s12   ;;  %s502_s12 = sphi %s529_s12, %s691_s12   ;;  %s498_s11 = sphi %s527_s11, %s690_s11   ;;  %s494_s10 = sphi %s525_s10, %s689_s10   ;;  %s490_s9 = sphi %s523_s9, %s688_s9  }
   0x7   : > { %s23_s15 = ssub.s32 %s502_s12, %s545_s14  ;;  %s26_s16 = sadd.s32 1, %s498_s11 }
   0x8   : > { %p24_p0 = scmp.eq.s32.totalorder %s23_s15, 0  ;;  %p33_p1 = scmp.ne.s32.totalorder %s498_s11, %s494_s10 }
   0x9   : > { %p34_p2 = scmp.eq.s32.totalorder %s502_s12, 0  ;;  %p39_p3 = scmp.ne.s32.totalorder %s494_s10, %s490_s9 }
   0xa   : > { %s555_s17 = scalar_select %p24_p0, %s498_s11, %s26_s16  }
   0xb   : > { %p35_p4 = por %p34_p2, %p33_p1  ;;  %p40_p5 = scmp.eq.s32.totalorder %s542_s13, 0 }
   0xc   : > { %p353_p6 = scmp.lt.s32.totalorder %s502_s12, 3  ;;  %s564_s19 = sand.u32 1, %s498_s11  }
   0xd   : > { %p559_p7 = por %p40_p5, %p39_p3  ;;  %s322_s20 = sshll.u32 %s564_s19, 3 }
   0xe   : > { %s323_s21 = sshll.u32 %s502_s12, 7  ;;  %s114_s25 = scalar_lea.vmem [#allocation3], %s322_s20 }
   0xf   : > { %s681_s18 = scalar_select %p559_p7, 1, 0 }
  0x10   : > { %s573_s24 = scalar_lea.hbm %s677_s0, %s323_s21  ;;  %s121_s26 = sshll.u32 %s114_s25, 4  ;;  %s577_s26 = int_to_ptr.vmem [resolvable:$true] %s121_s26 }
  0x11   : > { %p579_p8 = pnand %p353_p6, %p35_p4  ;;  %s111_s28 = scalar_lea.sflag [#allocation4], %s564_s19 }
  0x12   : > { %s394_s29 = scalar_lea.hbm %s573_s24, 128  ;;  %s399_s4 = scalar_lea.hbm %s677_s0, 384 }
  0x13   : > { %p395_p11 = scmp.ne.s32.totalorder %s573_s24, %s394_s29  ;;  %p396_p12 = pneg %p579_p8 }
  0x14   : > { %p400_p1 = scmp.lt.s32.totalorder %s573_s24, %s677_s0  ;;  %p401_p2 = scmp.lt.s32.totalorder %s399_s4, %s394_s29 }
  0x15   : > { %p397_p13 = pnand %p396_p12, %p395_p11 }
  0x16   : > { %p402_p3 = por %p401_p2, %p400_p1 }
  0x17   : > { %p398_p0 = pneg %p397_p13 }
  0x19   : > { %p403_p4 = pnand %p402_p3, %p398_p0 }
  0x1b   : > { %406 = shalt.err (!%p403_p4)
}
  0x1c   : > { %s407_s7 = scalar_lea.vmem %s577_s26, 128  ;;  %s504_s8 = smov [#allocation3]  }
  0x1d   : > { %p408_p5 = scmp.ne.s32.totalorder %s577_s26, %s407_s7  ;;  %s412_s9 = sshll.u32 %s504_s8, 4  ;;  %s413_s9 = int_to_ptr.vmem [resolvable:$false] %s412_s9 }
  0x1e   : > { %s414_s15 = scalar_lea.vmem %s413_s9, 256  ;;  %p415_p13 = scmp.lt.s32.totalorder %s577_s26, %s413_s9 }
  0x1f   : > { %p410_p6 = pnand %p408_p5, %p396_p12  ;;  %p416_p9 = scmp.lt.s32.totalorder %s414_s15, %s407_s7 }
  0x21   : > { %p411_p11 = pneg %p410_p6  ;;  %p417_p10 = por %p416_p9, %p415_p13 }
  0x23   : > { %p418_p1 = pnand %p417_p10, %p411_p11 }
  0x25   : > { %421 = shalt.err (!%p418_p1)
}
  0x26   : > { %349 = dma.hbm_to_vmem [thread:$0]  (!%p579_p8), %s573_s24, 128, %s577_s26, %s111_s28  }
  0x27   : > { %p683_p0 = scmp.lt.s32.totalorder %s502_s12, 4  ;;  %p684_p2 = scmp.ge.s32.totalorder %s502_s12, 1 }
  0x28   : > { %s623_s25 = scalar_lea.hbm %s678_s1, %s323_s21  ;;  %s132_s29 = scalar_lea.vmem [#allocation6], %s322_s20 }
  0x29   : > { %p614_p3 = pnand %p684_p2, %p683_p0  ;;  %s139_s30 = sshll.u32 %s132_s29, 4  ;;  %s140_s30 = int_to_ptr.vmem [resolvable:$true] %s139_s30 }
  0x2a   : > { %s129_s24 = scalar_lea.sflag [#allocation7], %s564_s19  ;;  %s422_s26 = scalar_lea.hbm %s623_s25, 128 }
  0x2b   : > { %s685_s16 = scalar_select %p614_p3, 1, 0 }
  0x2c   : > { %p423_p9 = scmp.ne.s32.totalorder %s623_s25, %s422_s26  ;;  %s427_s3 = scalar_lea.hbm %s678_s1, 384 }
  0x2d   : > { %p428_p5 = scmp.lt.s32.totalorder %s623_s25, %s678_s1  ;;  %p429_p6 = scmp.lt.s32.totalorder %s427_s3, %s422_s26 }
  0x2e   : > { %p425_p10 = pnand %p423_p9, %p396_p12 }
  0x2f   : > { %p430_p11 = por %p429_p6, %p428_p5 }
  0x30   : > { %p426_p4 = pneg %p425_p10 }
  0x32   : > { %p431_p13 = pnand %p430_p11, %p426_p4 }
  0x34   : > { %434 = shalt.err (!%p431_p13)
}
  0x35   : > { %s435_s20 = scalar_lea.vmem %s140_s30, 128  ;;  %s505_s19 = smov [#allocation6]  }
  0x36   : > { %p436_p1 = scmp.ne.s32.totalorder %s140_s30, %s435_s20  ;;  %s440_s5 = sshll.u32 %s505_s19, 4  ;;  %s441_s5 = int_to_ptr.vmem [resolvable:$false] %s440_s5 }
  0x37   : > { %s442_s6 = scalar_lea.vmem %s441_s5, 256  ;;  %p443_p9 = scmp.lt.s32.totalorder %s140_s30, %s441_s5 }
  0x38   : > { %p438_p0 = pnand %p436_p1, %p396_p12  ;;  %p444_p10 = scmp.lt.s32.totalorder %s442_s6, %s435_s20 }
  0x3a   : > { %p439_p2 = pneg %p438_p0  ;;  %p445_p7 = por %p444_p10, %p443_p9 }
  0x3c   : > { %p446_p3 = pnand %p445_p7, %p439_p2 }
  0x3e   : > { %449 = shalt.err (!%p446_p3)
}
  0x3f   : > { %352 = dma.hbm_to_vmem [thread:$0]  (!%p579_p8), %s623_s25, 128, %s140_s30, %s129_s24  }
  0x40   : > { %p686_p4 = scmp.ne.s32.totalorder %s685_s16, 0 }
  0x41   : > { %s150_s7 = sand.u32 (!%p686_p4), 1, %s494_s10   ;;  %p687_p12 = scmp.ne.s32.totalorder (!%p686_p4), %s681_s18, 0 }
  0x42   : > { %148 = sbr.rel (%p686_p4) target bundleno = 347 (0x15b), region = 28  ;;  %s327_s8 = sshll.u32 (!%p686_p4), %s150_s7, 3 }
  0x43   : > { %s151_s9 = scalar_lea.sflag (!%p686_p4), [#allocation4], %s150_s7  ;;  %s154_s15 = scalar_lea.vmem (!%p686_p4), [#allocation3], %s327_s8 }
  0x47   : > { %477 = dma.done.wait (%p687_p12), %s151_s9, 128  }
  0x48   : > { %479 = vsyncadd (%p687_p12), %s151_s9, 4294967168  ;;  %s160_s22 = scalar_lea.sflag [#allocation7], %s150_s7  ;;  %s163_s23 = scalar_lea.vmem [#allocation6], %s327_s8 }
  0x49   : > { %481 = dma.done.wait (%p687_p12), %s160_s22, 128  }
  0x4a   : > { %483 = vsyncadd (%p687_p12), %s160_s22, 4294967168  ;;  %p329_p7 = scmp.ne.s32.totalorder %s542_s13, 0 }
  0x4c   : > { %187 = sbr.rel (%p329_p7) target bundleno = 83 (0x53), region = 40 }
  0x51   : > { %v506_v0 = vmov 0.0  }
  0x52   : > { %188 = vst [vmem:[#allocation2] sm:$0xff] %v506_v0 }
  0x53 PF: > { %v189_v1 = vld [vmem:[%s154_s15] sm:$0xff]  ;;  %v190_v2 = vld [vmem:[%s163_s23] sm:$0xff]  ;;  %v208_v7 = vlaneseq  ;;  %s330_s27 = sshll.u32 %s542_s13, 3  ;;  %p331_p8 = scmp.ne.s32.totalorder %s542_s13, 2 }
  0x54   : > { %v191_v3 = vsub.f32 %v189_v1, %v190_v2  ;;  %v213_v11 = vstv %s330_s27 }
  0x55   : > { %v209_v10 = vshrl.u32 %v208_v7, 7  ;;  %v211_v15 = vand.u32 127, %v208_v7 }
  0x56   : > { %v194_v4 = vand.u32 2147483647, %v191_v3  ;;  %v192_v17 = vsub.f32 0.0, %v191_v3 }
  0x57   : > { %v214_v13 = vadd.s32 %v213_v11, %v209_v10 }
  0x58   : > { %v195_v5 = vsub.f32 0.0, %v194_v4  ;;  %v193_v22 = vmax.f32 %v192_v17, 0.0 }
  0x59   : > { %v215_v16 = vmul.u32 128, %v214_v13  ;;  %v220_v26 = vld [vmem:[#allocation2] sm:$0xff] }
  0x5a   : > { %v196_v6 = vmul.f32 1.442695, %v195_v5 }
  0x5b   : > { %v216_v20 = vadd.s32 %v215_v16, %v211_v15 }
  0x5c   : > { %390 = vpow2.f32 %v196_v6 }
  0x5d   : > { %vm217_vm1 = vcmp.lt.s32.totalorder %v216_v20, 2400 }
  0x69   : > { %v391_v8 = vpop.eup %390 }
  0x6a   : > { %v198_v9 = vadd.f32 1.0, %v391_v8  ;;  %v201_v12 = vmul.f32 -0.5, %v391_v8  ;;  %v204_v18 = vand.u32 2147483647, %v391_v8 }
  0x6c   : > { %392 = vlog2.f32 %v198_v9  ;;  %v202_v14 = vadd.f32 1.0, %v201_v12  ;;  %vm205_vm0 = vcmp.lt.f32.partialorder %v204_v18, 0.0004427343 }
  0x6e   : > { %v203_v19 = vmul.f32 %v391_v8, %v202_v14 }
  0x79   : > { %v393_v21 = vpop.eup %392 }
  0x7a   : > { %v200_v23 = vmul.f32 0.6931472, %v393_v21 }
  0x7c   : > { %v206_v24 = vsel %vm205_vm0, %v203_v19, %v200_v23 }
  0x7d   : > { %v207_v25 = vadd.f32 %v206_v24, %v193_v22 }
  0x7e   : > { %226 = sbr.rel (%p331_p8) target bundleno = 341 (0x155), region = 44 }
  0x7f   : > { %v218_v27 = vsel %vm217_vm1, %v207_v25, 0.0 }
  0x80   : > { %v221_v28 = vadd.f32 %v220_v26, %v218_v27 }
  0x82   : > { %222 = vst [vmem:[#allocation2] sm:$0xff] %v221_v28 }
  0x89   : > { %v227_v29 = vld [vmem:[#allocation2] sm:$0xff] }
  0x8a   : > { %228 = vadd.xlane.f32.xlu0 %v227_v29 }
 0x113   : > { %v229_v30 = vpop.xlane.xlu0 %228 }
 0x114   : > { %v230_v31 = vrot.slane %v229_v30, 4 }
 0x116   : > { %v231_v32 = vadd.f32 %v230_v31, %v229_v30 }
 0x118   : > { %v232_v33 = vrot.slane %v231_v32, 2 }
 0x11a   : > { %v233_v34 = vadd.f32 %v232_v33, %v231_v32 }
 0x11c   : > { %v234_v35 = vrot.slane %v233_v34, 1 }
 0x11e   : > { %v235_v36 = vadd.f32 %v234_v35, %v233_v34 }
 0x120   : > { %336 = vpush %v235_v36 }
 0x151   : > { %s337_s18 = spop %336 }
 0x152   : > { %s237_s16 = smul.f32 0.00041666668, %s337_s18 }
 0x154   : > { %239 = sst [smem:[#allocation8]] %s237_s16 }
 0x155 PF: > { %p354_p3 = scmp.eq.s32.totalorder %s542_s13, 2  ;;  %s507_s25 = smov [#allocation8]  }
 0x157   : > { %343 = dma.smem_to_hbm (%p354_p3), %s507_s25, 16, %s679_s2, [#allocation5]  }
 0x158   : > { %485 = dma.done.wait (%p354_p3), [#allocation5], 16  }
 0x159   : > { %487 = vsyncadd (%p354_p3), [#allocation5], 4294967280 }
 0x15a   : > { %253 = sfence }
 0x15b PF: > { %p16_p5 = scmp.ge.s32.totalorder %s545_s14, 5   ;;  %s688_s9 = smov %s494_s10 }
 0x15c   : > { %s689_s10 = smov %s498_s11  ;;  %s690_s11 = smov %s555_s17 }
 0x15d   : > { %s691_s12 = smov %s545_s14  ;;  %18 = sbr.rel (!%p16_p5) target bundleno = 6 (0x6), region = 87 }
 0x162   :  { %259 = vsyncpa [#allocation4], 1 }
 0x163   :  { %261 = vsyncpa [#allocation4 + $0x1], 1 }
 0x164   :  { %262 = vsyncpa [#allocation7], 1 }
 0x165   :  { %264 = vsyncpa [#allocation7 + $0x1], 1 }
 0x166   :  { %265 = vsyncpa [#allocation5], 1 }
 0x167   :  { %267 = vsyncpa [#allocation5 + $0x1], 1 }

</bundles_post_ra>
